<compile_context>
chip_gen: v6e
topology: v6e:2x2x1
jax: 0.10.0
libtpu: 0.0.40
codegen_flags: <defaults>
</compile_context>

<pallas_src>
import jax
import jax.numpy as jnp
from jax.experimental import pallas as pl
from jax.experimental.pallas import tpu as pltpu


def _round_up(x, m):
    return ((x + m - 1) // m) * m


def mlp_policy_kernel(x_ref, w1_ref, b1_ref, w2_ref, b2_ref, w3_ref, b3_ref,
                      mean_ref):
    # Hidden layer 1: tanh(x @ W1 + b1)   (f32 accumulation on the MXU)
    h = jnp.tanh(
        jnp.dot(x_ref[...], w1_ref[...], preferred_element_type=jnp.float32)
        + b1_ref[...]
    )
    # Hidden layer 2: tanh(h @ W2 + b2)
    h = jnp.tanh(
        jnp.dot(h.astype(w2_ref.dtype), w2_ref[...],
                preferred_element_type=jnp.float32)
        + b2_ref[...]
    )
    # Output layer (identity activation): mean of the Gaussian policy.
    # Output lanes are padded to a multiple of 128 -> unmasked, lane-dense stores.
    mean_ref[...] = (
        jnp.dot(h.astype(w3_ref.dtype), w3_ref[...],
                preferred_element_type=jnp.float32)
        + b3_ref[...]
    ).astype(mean_ref.dtype)


def mlp_policy_forward(obs, params, *, batch_tile=256, compute_dtype=jnp.float32):
    """Runs the MLPPolicy forward pass. Returns (mean, std).

    compute_dtype=jnp.bfloat16 casts obs/weights for the v6e/v7x bf16 MXU path
    (accumulation stays f32).  Default f32 matches the PyTorch reference closely.
    """
    w1, b1, w2, b2, w3, b3, logstd = params
    B, ob_dim = obs.shape
    size = w1.shape[1]
    ac_dim = w3.shape[1]

    # --- batch tiling: big tiles, pad ragged batches (no hard assert) ---------
    bt = min(batch_tile, _round_up(B, 8))          # tile never exceeds padded batch
    Bp = _round_up(B, bt)                           # padded batch, multiple of bt
    if Bp != B:
        obs = jnp.pad(obs, ((0, Bp - B), (0, 0)))

    # --- lane-dense output: pad ac_dim -> multiple of 128 ---------------------
    ac_pad = _round_up(ac_dim, 128)
    w3_p = jnp.pad(w3, ((0, 0), (0, ac_pad - ac_dim)))
    b3_p = jnp.pad(b3, ((0, ac_pad - ac_dim),))

    # Cast matmul operands (f32 by default; bf16 on v6e/v7x if requested).
    obs_c = obs.astype(compute_dtype)
    w1_c = w1.astype(compute_dtype)
    w2_c = w2.astype(compute_dtype)
    w3_c = w3_p.astype(compute_dtype)

    # Biases kept 2D (1, N), f32 (added to the f32 MXU accumulator).
    b1_2d = b1.reshape(1, size).astype(jnp.float32)
    b2_2d = b2.reshape(1, size).astype(jnp.float32)
    b3_2d = b3_p.reshape(1, ac_pad).astype(jnp.float32)

    grid = (pl.cdiv(Bp, bt),)

    # Grid-invariant operands: same (full) block every grid step.
    full = lambda shape: pl.BlockSpec(shape, lambda i: (0, 0))

    mean_padded = pl.pallas_call(
        mlp_policy_kernel,
        out_shape=jax.ShapeDtypeStruct((Bp, ac_pad), jnp.float32),
        grid_spec=pltpu.PrefetchScalarGridSpec(
            num_scalar_prefetch=0,
            grid=grid,
            in_specs=[
                pl.BlockSpec((bt, ob_dim), lambda i: (i, 0)),  # obs tile
                full((ob_dim, size)),    # W1
                full((1, size)),         # b1
                full((size, size)),      # W2
                full((1, size)),         # b2
                full((size, ac_pad)),    # W3 (lane-padded)
                full((1, ac_pad)),       # b3 (lane-padded)
            ],
            out_specs=pl.BlockSpec((bt, ac_pad), lambda i: (i, 0)),  # mean tile
        ),
        compiler_params=pltpu.CompilerParams(
            # No revisited output block -> batch axis is embarrassingly parallel
            # (sharded across both TensorCores on v7x).
            dimension_semantics=("parallel",),
        ),
    )(obs_c, w1_c, b1_2d, w2_c, b2_2d, w3_c, b3_2d)

    mean = mean_padded[:B, :ac_dim]
    # std = exp(logstd): a handful of EUP ops -- plain JAX, effectively free.
    std = jnp.exp(logstd.astype(jnp.float32))
    return mean, std


def init_params(key, ob_dim, ac_dim, size, n_layers):
    """Deterministic synthetic init mirroring build_mlp's parameter shapes."""
    assert n_layers == 2  # this script hard-codes a 2-hidden-layer MLP in the kernel
    ks = jax.random.split(key, 6)
    scale = 0.1
    w1 = scale * jax.random.normal(ks[0], (ob_dim, size), jnp.float32)
    b1 = scale * jax.random.normal(ks[1], (size,), jnp.float32)
    w2 = scale * jax.random.normal(ks[2], (size, size), jnp.float32)
    b2 = scale * jax.random.normal(ks[3], (size,), jnp.float32)
    w3 = scale * jax.random.normal(ks[4], (size, ac_dim), jnp.float32)
    b3 = scale * jax.random.normal(ks[5], (ac_dim,), jnp.float32)
    logstd = jnp.zeros((ac_dim,), jnp.float32)  # nn.Parameter(torch.zeros(ac_dim))
    return (w1, b1, w2, b2, w3, b3, logstd)


def reference_forward(obs, params):
    w1, b1, w2, b2, w3, b3, logstd = params
    h = jnp.tanh(obs @ w1 + b1)
    h = jnp.tanh(h @ w2 + b2)
    mean = h @ w3 + b3
    std = jnp.exp(logstd)
    return mean, std


if __name__ == "__main__":
    # Small shapes consistent with MLPPolicy(ac_dim=8, ob_dim=16, n_layers=2, size=32)
    B, ob_dim, ac_dim, size, n_layers = 16, 16, 8, 32, 2

    key = jax.random.PRNGKey(0)
    k_obs, k_params = jax.random.split(key)
    obs = jax.random.normal(k_obs, (B, ob_dim), jnp.float32)
    params = init_params(k_params, ob_dim, ac_dim, size, n_layers)

    # Default path: single grid step (bt = padded B), f32 math.
    mean, std = mlp_policy_forward(obs, params)
    jax.block_until_ready((mean, std))

    mean_ref, std_ref = reference_forward(obs, params)
    assert mean.shape == (B, ac_dim) and std.shape == (ac_dim,)
    assert jnp.allclose(mean, mean_ref, atol=1e-5, rtol=1e-5)
    assert jnp.allclose(std, std_ref, atol=1e-6, rtol=1e-6)

    # Ragged-batch path: B not a multiple of the tile -> pad + slice inside wrapper.
    obs_ragged = obs[:10]
    mean_r, std_r = mlp_policy_forward(obs_ragged, params, batch_tile=8)
    jax.block_until_ready((mean_r, std_r))
    mean_r_ref, _ = reference_forward(obs_ragged, params)
    assert mean_r.shape == (10, ac_dim)
    assert jnp.allclose(mean_r, mean_r_ref, atol=1e-5, rtol=1e-5)

    # TODO(synk): MultivariateNormal construction / .sample() in get_action() is
    # host-side distribution logic; the kernel returns its sufficient statistics
    # (mean, std).
    print("KERNEL_OK")
</pallas_src>

<mosaic_0001>
module attributes {stable_mosaic.version = 11 : i64} {
  func.func @mlp_policy_kernel(%arg0: i32, %arg1: memref<16x16xf32, #tpu.memory_space<vmem>>, %arg2: memref<16x32xf32, #tpu.memory_space<vmem>>, %arg3: memref<1x32xf32, #tpu.memory_space<vmem>>, %arg4: memref<32x32xf32, #tpu.memory_space<vmem>>, %arg5: memref<1x32xf32, #tpu.memory_space<vmem>>, %arg6: memref<32x128xf32, #tpu.memory_space<vmem>>, %arg7: memref<1x128xf32, #tpu.memory_space<vmem>>, %arg8: memref<16x128xf32, #tpu.memory_space<vmem>>) attributes {dimension_semantics = [#tpu.dimension_semantics<parallel>], iteration_bounds = array<i64: 1>, scalar_prefetch = 0 : i64, scratch_operands = 0 : i64, tpu.core_type = #tpu.core_type<tc>, window_params = [{transform_indices = @transform_0, window_bounds = array<i64: 16, 16>}, {pipeline_mode = #tpu.pipeline_mode<synchronous>, transform_indices = @transform_1, window_bounds = array<i64: 16, 32>}, {pipeline_mode = #tpu.pipeline_mode<synchronous>, transform_indices = @transform_2, window_bounds = array<i64: 1, 32>}, {pipeline_mode = #tpu.pipeline_mode<synchronous>, transform_indices = @transform_3, window_bounds = array<i64: 32, 32>}, {pipeline_mode = #tpu.pipeline_mode<synchronous>, transform_indices = @transform_4, window_bounds = array<i64: 1, 32>}, {pipeline_mode = #tpu.pipeline_mode<synchronous>, transform_indices = @transform_5, window_bounds = array<i64: 32, 128>}, {pipeline_mode = #tpu.pipeline_mode<synchronous>, transform_indices = @transform_6, window_bounds = array<i64: 1, 128>}, {transform_indices = @transform_7, window_bounds = array<i64: 16, 128>}]} {
    %c0 = arith.constant 0 : index
    %c0_0 = arith.constant 0 : index
    %0 = vector.load %arg1[%c0, %c0_0] : memref<16x16xf32, #tpu.memory_space<vmem>>, vector<16x16xf32>
    %c0_1 = arith.constant 0 : index
    %c0_2 = arith.constant 0 : index
    %1 = vector.load %arg2[%c0_1, %c0_2] : memref<16x32xf32, #tpu.memory_space<vmem>>, vector<16x32xf32>
    %cst = arith.constant dense<0.000000e+00> : vector<16x32xf32>
    %2 = tpu.matmul %0, %1, %cst {dimension_numbers = #tpu.dot_dimension_numbers<[1], [0], [0], [1], [0, 0, 1, 1], [], []>} : vector<16x16xf32>, vector<16x32xf32>, vector<16x32xf32> -> vector<16x32xf32>
    %c0_3 = arith.constant 0 : index
    %c0_4 = arith.constant 0 : index
    %3 = vector.load %arg3[%c0_3, %c0_4] : memref<1x32xf32, #tpu.memory_space<vmem>>, vector<1x32xf32>
    %4 = vector.broadcast %3 : vector<1x32xf32> to vector<16x32xf32>
    %5 = arith.addf %2, %4 : vector<16x32xf32>
    %6 = math.tanh %5 : vector<16x32xf32>
    %c0_5 = arith.constant 0 : index
    %c0_6 = arith.constant 0 : index
    %7 = vector.load %arg4[%c0_5, %c0_6] : memref<32x32xf32, #tpu.memory_space<vmem>>, vector<32x32xf32>
    %cst_7 = arith.constant dense<0.000000e+00> : vector<16x32xf32>
    %8 = tpu.matmul %6, %7, %cst_7 {dimension_numbers = #tpu.dot_dimension_numbers<[1], [0], [0], [1], [0, 0, 1, 1], [], []>} : vector<16x32xf32>, vector<32x32xf32>, vector<16x32xf32> -> vector<16x32xf32>
    %c0_8 = arith.constant 0 : index
    %c0_9 = arith.constant 0 : index
    %9 = vector.load %arg5[%c0_8, %c0_9] : memref<1x32xf32, #tpu.memory_space<vmem>>, vector<1x32xf32>
    %10 = vector.broadcast %9 : vector<1x32xf32> to vector<16x32xf32>
    %11 = arith.addf %8, %10 : vector<16x32xf32>
    %12 = math.tanh %11 : vector<16x32xf32>
    %c0_10 = arith.constant 0 : index
    %c0_11 = arith.constant 0 : index
    %13 = vector.load %arg6[%c0_10, %c0_11] : memref<32x128xf32, #tpu.memory_space<vmem>>, vector<32x128xf32>
    %cst_12 = arith.constant dense<0.000000e+00> : vector<16x128xf32>
    %14 = tpu.matmul %12, %13, %cst_12 {dimension_numbers = #tpu.dot_dimension_numbers<[1], [0], [0], [1], [0, 0, 1, 1], [], []>} : vector<16x32xf32>, vector<32x128xf32>, vector<16x128xf32> -> vector<16x128xf32>
    %c0_13 = arith.constant 0 : index
    %c0_14 = arith.constant 0 : index
    %15 = vector.load %arg7[%c0_13, %c0_14] : memref<1x128xf32, #tpu.memory_space<vmem>>, vector<1x128xf32>
    %16 = vector.broadcast %15 : vector<1x128xf32> to vector<16x128xf32>
    %17 = arith.addf %14, %16 : vector<16x128xf32>
    %c0_15 = arith.constant 0 : index
    %c0_16 = arith.constant 0 : index
    %18 = vector.load %arg8[%c0_15, %c0_16] : memref<16x128xf32, #tpu.memory_space<vmem>>, vector<16x128xf32>
    tpu.vector_store %arg8[%c0_15, %c0_16], %17 {strides = array<i32>} : memref<16x128xf32, #tpu.memory_space<vmem>>, vector<16x128xf32>,
    return
  }
  func.func @transform_0(%arg0: i32) -> (i32, i32) {
    %c0_i32 = arith.constant 0 : i32
    %c0_i32_0 = arith.constant 0 : i32
    return %arg0, %c0_i32 : i32, i32
  }
  func.func @transform_1(%arg0: i32) -> (i32, i32) {
    %c0_i32 = arith.constant 0 : i32
    %c0_i32_0 = arith.constant 0 : i32
    %c0_i32_1 = arith.constant 0 : i32
    return %c0_i32, %c0_i32_0 : i32, i32
  }
  func.func @transform_2(%arg0: i32) -> (i32, i32) {
    %c0_i32 = arith.constant 0 : i32
    %c0_i32_0 = arith.constant 0 : i32
    %c0_i32_1 = arith.constant 0 : i32
    return %c0_i32, %c0_i32_0 : i32, i32
  }
  func.func @transform_3(%arg0: i32) -> (i32, i32) {
    %c0_i32 = arith.constant 0 : i32
    %c0_i32_0 = arith.constant 0 : i32
    %c0_i32_1 = arith.constant 0 : i32
    return %c0_i32, %c0_i32_0 : i32, i32
  }
  func.func @transform_4(%arg0: i32) -> (i32, i32) {
    %c0_i32 = arith.constant 0 : i32
    %c0_i32_0 = arith.constant 0 : i32
    %c0_i32_1 = arith.constant 0 : i32
    return %c0_i32, %c0_i32_0 : i32, i32
  }
  func.func @transform_5(%arg0: i32) -> (i32, i32) {
    %c0_i32 = arith.constant 0 : i32
    %c0_i32_0 = arith.constant 0 : i32
    %c0_i32_1 = arith.constant 0 : i32
    return %c0_i32, %c0_i32_0 : i32, i32
  }
  func.func @transform_6(%arg0: i32) -> (i32, i32) {
    %c0_i32 = arith.constant 0 : i32
    %c0_i32_0 = arith.constant 0 : i32
    %c0_i32_1 = arith.constant 0 : i32
    return %c0_i32, %c0_i32_0 : i32, i32
  }
  func.func @transform_7(%arg0: i32) -> (i32, i32) {
    %c0_i32 = arith.constant 0 : i32
    %c0_i32_0 = arith.constant 0 : i32
    return %arg0, %c0_i32 : i32, i32
  }
}

</mosaic_0001>

<bundles_post_ra>
// kernel: tpu_custom_call.1
= control target key start
LH: loop header
LB: loop body
LE: loop exit
PB: predicated region body
PF: predicated region fallthrough
CT: control target
= control target key end

     0   :  { %12 = vsyncpa [#allocation3], 0  ;;  %s652_s0 = inlined_call_operand.hbm [shape: f32[16,16], index: 0, kind: input, shape index: {}]   ;;  %s653_s1 = inlined_call_operand.hbm [shape: f32[16,32], index: 1, kind: input, shape index: {}]   ;;  %s654_s2 = inlined_call_operand.vmem [shape: f32[1,32], index: 2, kind: input, shape index: {}]   ;;  %s655_s3 = inlined_call_operand.hbm [shape: f32[32,32], index: 3, kind: input, shape index: {}]   ;;  %s656_s4 = inlined_call_operand.vmem [shape: f32[1,32], index: 4, kind: input, shape index: {}]   ;;  %s657_s5 = inlined_call_operand.hbm [shape: f32[32,128], index: 5, kind: input, shape index: {}]   ;;  %s658_s6 = inlined_call_operand.vmem [shape: f32[1,128], index: 6, kind: input, shape index: {}]   ;;  %s659_s7 = inlined_call_operand.hbm [shape: f32[16,128], index: 7, kind: output, shape index: {}]  }
   0x1   :  { %13 = vsyncpa [#allocation6], 0 }
   0x2   :  { %14 = vsyncpa [#allocation9], 0 }
   0x3   :  { %15 = vsyncpa [#allocation4], 0  ;;  %s562_s24 = smov [#allocation5]   ;;  %s563_s26 = smov [#allocation2]  }
   0x4   :  { %s33_s25 = sshll.u32 %s562_s24, 4  ;;  %s21_s27 = sshll.u32 %s563_s26, 4  ;;  %s34_s25 = int_to_ptr.vmem [resolvable:$true] %s33_s25  ;;  %s22_s27 = int_to_ptr.vmem [resolvable:$true] %s21_s27 }
   0x5   :  { %s462_s28 = scalar_lea.vmem %s34_s25, 256  ;;  %p467_p1 = scmp.lt.s32.totalorder %s34_s25, %s34_s25 }
   0x6   :  { %p463_p0 = scmp.ne.s32.totalorder %s34_s25, %s462_s28  ;;  %p468_p2 = scmp.lt.s32.totalorder %s462_s28, %s462_s28 }
   0x8   :  { %p469_p3 = por %p468_p2, %p467_p1 }
   0xa   :  { %p470_p4 = pnand %p469_p3, %p463_p0 }
   0xc   :  { %473 = shalt.err (!%p470_p4)
}
   0xd   :  { %s564_s29 = smov 128   ;;  %s565_s30 = smov 8  }
   0xe   :  { %39 = dma.hbm_to_vmem [thread:$0]  %s653_s1, 256, %s34_s25, [#allocation6], %s564_s29, %s564_s29, %s565_s30  }
   0xf   :  { %s482_s10 = scalar_lea.vmem %s22_s27, 256  ;;  %p487_p6 = scmp.lt.s32.totalorder %s22_s27, %s22_s27 }
  0x10   :  { %p483_p5 = scmp.ne.s32.totalorder %s22_s27, %s482_s10  ;;  %p488_p7 = scmp.lt.s32.totalorder %s482_s10, %s482_s10 }
  0x12   :  { %p489_p8 = por %p488_p7, %p487_p6 }
  0x14   :  { %p490_p9 = pnand %p489_p8, %p483_p5 }
  0x16   :  { %493 = shalt.err (!%p490_p9)
}
  0x17   :  { %27 = dma.hbm_to_vmem [thread:$0]  %s652_s0, 256, %s22_s27, [#allocation3], %s564_s29, %s564_s29, %s565_s30  }
  0x18   :  { %s566_s13 = smov [#allocation7]   ;;  %s567_s15 = smov [#allocation8]  }
  0x19   :  { %s47_s14 = sshll.u32 %s566_s13, 4  ;;  %s61_s16 = sshll.u32 %s567_s15, 4  ;;  %s48_s14 = int_to_ptr.vmem [resolvable:$true] %s47_s14  ;;  %s62_s16 = int_to_ptr.vmem [resolvable:$true] %s61_s16 }
  0x1a   :  { %s502_s1 = scalar_lea.vmem %s48_s14, 512  ;;  %p507_p11 = scmp.lt.s32.totalorder %s48_s14, %s48_s14 }
  0x1b   :  { %p503_p10 = scmp.ne.s32.totalorder %s48_s14, %s502_s1  ;;  %p508_p12 = scmp.lt.s32.totalorder %s502_s1, %s502_s1 }
  0x1d   :  { %p509_p13 = por %p508_p12, %p507_p11 }
  0x1f   :  { %p510_p0 = pnand %p509_p13, %p503_p10 }
  0x21   :  { %513 = shalt.err (!%p510_p0)
}
  0x22   :  { %53 = dma.hbm_to_vmem [thread:$0]  %s655_s3, 512, %s48_s14, [#allocation6], %s564_s29, %s564_s29, %s565_s30  }
  0x23   :  { %s522_s0 = scalar_lea.vmem %s62_s16, 512  ;;  %p527_p2 = scmp.lt.s32.totalorder %s62_s16, %s62_s16 }
  0x24   :  { %p523_p1 = scmp.ne.s32.totalorder %s62_s16, %s522_s0  ;;  %p528_p3 = scmp.lt.s32.totalorder %s522_s0, %s522_s0 }
  0x26   :  { %p529_p4 = por %p528_p3, %p527_p2 }
  0x28   :  { %p530_p5 = pnand %p529_p4, %p523_p1 }
  0x2a   :  { %533 = shalt.err (!%p530_p5)
}
  0x2b   :  { %67 = dma.hbm_to_vmem [thread:$0]  %s657_s5, 512, %s62_s16, [#allocation9], %s564_s29, %s564_s29, %s565_s30  }
  0x2c   :  { %554 = dma.done.wait [#allocation3], 256  }
  0x2d   :  { %555 = vsyncadd [#allocation3], 4294967040 }
  0x2e   :  { %556 = dma.done.wait [#allocation6], 768  }
  0x2f   :  { %557 = vsyncadd [#allocation6], 4294966528 }
  0x30   :  { %558 = dma.done.wait [#allocation9], 512  }
  0x31   :  { %559 = vsyncadd [#allocation9], 4294966784  ;;  %vm93_vm0 = vcmask 130048   ;;  %v85_v0 = vld [vmem:[#allocation5 + $0x8] sm:$0xff]  ;;  %v84_v1 = vld [vmem:[#allocation5] sm:$0xff]  ;;  %vm188_vm1 = vcmask 261120  }
  0x32   :  { %v82_v2 = vld [vmem:[#allocation2] sm:$0xff]  ;;  %410 = vmatprep.subr.mxu0 %v85_v0  ;;  %v83_v3 = vld [vmem:[#allocation2 + $0x8] sm:$0xff]  ;;  %v180_v4 = vld [vmem:[#allocation7 + $0x18] sm:$0xff]  ;;  %s568_s24 = smov [#allocation10]  }
  0x33   :  { %414 = vmatprep.mubr.msk.f32.mxu0 %vm93_vm0, %v82_v2  ;;  %411 = vmatpush3.msra.mxu0 %v85_v0  ;;  %v179_v5 = vld [vmem:[#allocation7 + $0x10] sm:$0xff]  ;;  %v178_v6 = vld [vmem:[#allocation7 + $0x8] sm:$0xff]  ;;  %v177_v7 = vld [vmem:[#allocation7] sm:$0xff]  ;;  %s371_s25 = sshll.u32 %s568_s24, 4  ;;  %s372_s25 = int_to_ptr.vmem [resolvable:$true] %s371_s25 }
  0x34   :  { %412 = vmatprep.subr.mxu0 %v84_v1  ;;  %417 = vmatprep.subr.mxu1 %v180_v4  ;;  %v385_v8 = vld [vmem:[%s654_s2] ss:$0 sm:$0xff]  ;;  %v275_v15 = vld [vmem:[#allocation8 + $0x18] sm:$0xff]  ;;  %v274_v16 = vld [vmem:[#allocation8 + $0x10] sm:$0xff]  ;;  %p539_p7 = scmp.lt.s32.totalorder %s372_s25, %s372_s25 }
  0x35   :  { %413 = vmatpush3.msra.mxu0 %v84_v1  ;;  %418 = vmatpush3.msra.mxu1 %v180_v4  ;;  %v273_v17 = vld [vmem:[#allocation8 + $0x8] sm:$0xff]  ;;  %v272_v18 = vld [vmem:[#allocation8] sm:$0xff] }
  0x36   :  { %415 = vmatmul.mubr.msk.f32.vlgmr.msra.gmra.mxu0 %vm93_vm0, %v83_v3  ;;  %419 = vmatprep.subr.mxu1 %v179_v5  ;;  %v388_v19 = vld [vmem:[%s656_s4] ss:$0 sm:$0xff]  ;;  %s534_s4 = scalar_lea.vmem %s372_s25, 256 }
  0x37   :  { %420 = vmatpush3.msra.mxu1 %v179_v5  ;;  %428 = vmatprep.subr.mxu0 %v275_v15  ;;  %v391_v26 = vld [vmem:[%s658_s6] ss:$0 sm:$0xff]  ;;  %p535_p6 = scmp.ne.s32.totalorder %s372_s25, %s534_s4  ;;  %p540_p8 = scmp.lt.s32.totalorder %s534_s4, %s534_s4 }
  0x38   :  { %421 = vmatprep.subr.mxu1 %v178_v6  ;;  %429 = vmatpush3.msra.mxu0 %v275_v15 }
  0x39   :  { %422 = vmatpush3.msra.mxu1 %v178_v6  ;;  %430 = vmatprep.subr.mxu0 %v274_v16  ;;  %p541_p9 = por %p540_p8, %p539_p7 }
  0x3a   :  { %423 = vmatprep.subr.mxu1 %v177_v7  ;;  %431 = vmatpush3.msra.mxu0 %v274_v16 }
  0x3b   :  { %424 = vmatpush3.msra.mxu1 %v177_v7  ;;  %432 = vmatprep.subr.mxu0 %v273_v17  ;;  %p542_p10 = pnand %p541_p9, %p535_p6 }
  0x3c   :  { %433 = vmatpush3.msra.mxu0 %v273_v17 }
  0x3d   :  { %434 = vmatprep.subr.mxu0 %v272_v18 }
  0x3e   :  { %435 = vmatpush3.msra.mxu0 %v272_v18 }
  0xf6   :  { %v416_v9 = vpop.f32.mrf.mxu0 }
  0xf7   :  { %v172_v10 = vadd.f32 %v416_v9, %v385_v8 }
  0xf8   :  { %v166_v11 = vpop.f32.mrf.mxu0 }
  0xf9   :  { %v167_v12 = vadd.f32 %v385_v8, %v166_v11 }
  0xfb   :  { %446 = vtanh.f32 %v167_v12 }
  0xfc   :  { %448 = vtanh.f32 %v172_v10 }
 0x108   :  { %v447_v13 = vpop.eup %446 }
 0x109   :  { %v449_v14 = vpop.eup %448  ;;  %425 = vmatprep.mubr.msk.f32.mxu1 %vm188_vm1, %v447_v13 }
 0x10a   :  { %426 = vmatmul.mubr.msk.f32.vlgmr.msra.gmra.mxu1 %vm188_vm1, %v449_v14 }
 0x1ca   :  { %v427_v20 = vpop.f32.mrf.mxu1 }
 0x1cb   :  { %v267_v21 = vadd.f32 %v427_v20, %v388_v19 }
 0x1cc   :  { %v261_v22 = vpop.f32.mrf.mxu1 }
 0x1cd   :  { %v262_v23 = vadd.f32 %v388_v19, %v261_v22 }
 0x1cf   :  { %450 = vtanh.f32 %v262_v23 }
 0x1d0   :  { %452 = vtanh.f32 %v267_v21 }
 0x1dc   :  { %v451_v24 = vpop.eup %450 }
 0x1dd   :  { %v453_v25 = vpop.eup %452  ;;  %436 = vmatprep.mubr.msk.f32.mxu0 %vm188_vm1, %v451_v24 }
 0x1de   :  { %437 = vmatmul.mubr.msk.f32.vlgmr.msra.gmra.mxu0 %vm188_vm1, %v453_v25 }
 0x29e   :  { %v438_v27 = vpop.f32.mrf.mxu0 }
 0x29f   :  { %v361_v28 = vadd.f32 %v438_v27, %v391_v26 }
 0x2a0   :  { %v355_v29 = vpop.f32.mrf.mxu0 }
 0x2a1   :  { %365 = vst [vmem:[#allocation10 + $0x8] sm:$0xff] %v361_v28  ;;  %v356_v30 = vadd.f32 %v391_v26, %v355_v29 }
 0x2a3   :  { %364 = vst [vmem:[#allocation10] sm:$0xff] %v356_v30 }
 0x2a4   :  { %545 = shalt.err (!%p542_p10)
}
 0x2a5   :  { %377 = dma.vmem_to_hbm [thread:$0]  %s372_s25, 256, %s659_s7, [#allocation4], %s564_s29, %s564_s29, %s565_s30  }
 0x2a6   :  { %560 = dma.done.wait [#allocation4], 256  }
 0x2a7   :  { %561 = vsyncadd [#allocation4], 4294967040 }
 0x2a8   :  { %381 = vsyncpa [#allocation3], 1 }
 0x2a9   :  { %382 = vsyncpa [#allocation6], 1 }
 0x2aa   :  { %383 = vsyncpa [#allocation9], 1 }
 0x2ab   :  { %384 = vsyncpa [#allocation4], 1 }

</bundles_post_ra>
